<compile_context>
chip_gen: v5e
topology: v5e:2x2
jax: 0.10.0
libtpu: 0.0.40
codegen_flags: <defaults>
</compile_context>

<pallas_src>
import jax
import jax.numpy as jnp
from jax.experimental import pallas as pl
from jax.experimental.pallas import tpu as pltpu


def _round_up(x, m):
    return (x + m - 1) // m * m


def _make_kernel(n_hidden):
    def kernel(x_ref, *refs):
        o_ref = refs[-1]          # (1, 1, TILE_B) f32 block, lane-dense store
        bo_ref = refs[-2]         # (1, 1) f32 in SMEM
        wo_ref = refs[-3]         # (1, H_last) bf16
        wb = refs[:-3]            # w1, b1, ..., wn, bn

        h = x_ref[...]            # (TILE_B, D_in) bf16; grad_reverse fwd == identity
        for li in range(n_hidden):
            w = wb[2 * li][...]            # (d_in, d_out) bf16
            b = wb[2 * li + 1][...]        # (1, d_out)    f32
            a = jnp.dot(h, w, preferred_element_type=jnp.float32) + b
            a = jnp.maximum(a, 0.0)        # activation fixed to ReLU
            # TODO(synk): training-mode dropout (pltpu.prng_random_bits mask) not
            # implemented; eval-mode dropout is identity, matching this forward.
            h = a.astype(jnp.bfloat16)     # MXU-native input for the next matmul

        # Output layer: contract the feature axis of both operands (minor dims,
        # same pattern as QK^T) so the batch lands on the lane axis.
        o = jax.lax.dot_general(
            wo_ref[...], h,
            dimension_numbers=(((1,), (1,)), ((), ())),
            preferred_element_type=jnp.float32)        # (1, TILE_B) f32
        o_ref[0] = o + bo_ref[0, 0]
    return kernel


def _choose_tile_b(B, tile_b):
    if B < 128:
        return B                                    # one tile == whole batch
    tb = _round_up(min(tile_b, B), 128)             # lane/sublane aligned tiles
    if B >= 2 * tb:
        return tb                                   # already >= 2 grid tiles
    # Mid-size batch: split into (at least) two tiles so both v7x TensorCores
    # get work under the "parallel" batch axis; harmless on v5e/v6e.
    return max(128, _round_up(pl.cdiv(B, 2), 128))


def domain_discriminator_forward(x, params, *, tile_b=1024):
    """x: (B, D_in). params: {'weights','biases','wo','bo'}. Returns (B, 1) f32 logits."""
    weights, biases = params["weights"], params["biases"]
    wo, bo = params["wo"], params["bo"]
    n_hidden = len(weights)
    B, d_in = x.shape

    if x.dtype != jnp.bfloat16:
        # Halves the dominant HBM stream; in a real network this cast fuses into
        # the producer (or the caller passes bf16 activations directly).
        x = x.astype(jnp.bfloat16)

    tb = _choose_tile_b(B, tile_b)
    num_tiles = pl.cdiv(B, tb)

    # x tiles stream over the batch grid; weights/biases stay VMEM-resident
    # (constant block index) and are single-buffered (fetched exactly once).
    resident = dict(pipeline_mode=pl.Buffered(1))
    in_specs = [pl.BlockSpec((tb, d_in), lambda i: (i, 0))]
    operands = [x]
    for w, b in zip(weights, biases):
        in_specs.append(pl.BlockSpec(w.shape, lambda i: (0, 0), **resident))
        in_specs.append(pl.BlockSpec(b.shape, lambda i: (0, 0), **resident))
        operands.extend([w, b])
    in_specs.append(pl.BlockSpec(wo.shape, lambda i: (0, 0), **resident))
    operands.append(wo)
    # 1x1 output bias as an SMEM scalar (no padded VMEM tile / extra DMA buffer).
    in_specs.append(pl.BlockSpec(memory_space=pltpu.MemorySpace.SMEM))
    operands.append(bo)

    # Lane-dense output slab (num_tiles, 1, tb); reshaped to (B, 1) outside.
    out_shape = jax.ShapeDtypeStruct((num_tiles, 1, tb), jnp.float32)
    out_spec = pl.BlockSpec((1, 1, tb), lambda i: (i, 0, 0))

    dims = [d_in] + [w.shape[1] for w in weights]
    rows = num_tiles * tb
    flops = 2 * rows * (sum(a * b for a, b in zip(dims[:-1], dims[1:])) + dims[-1])
    bytes_accessed = (2 * rows * d_in                                   # bf16 x
                      + sum(2 * int(w.size) + 4 * int(b.size)
                            for w, b in zip(weights, biases))
                      + 2 * int(wo.size) + 4                            # wo, bo
                      + 4 * rows)                                       # f32 out
    cost = pl.CostEstimate(flops=flops, transcendentals=0,
                           bytes_accessed=bytes_accessed)

    out = pl.pallas_call(
        _make_kernel(n_hidden),
        out_shape=out_shape,
        grid=(num_tiles,),
        in_specs=in_specs,
        out_specs=out_spec,
        compiler_params=pltpu.CompilerParams(
            dimension_semantics=("parallel",),
            vmem_limit_bytes=64 * 1024 * 1024),
        cost_estimate=cost,
    )(*operands)

    return out.reshape(rows, 1)[:B]


def init_params(key, input_size, hidden_sizes):
    """PyTorch-style U(-1/sqrt(fan_in), 1/sqrt(fan_in)) init.

    Hidden weights are stored as (in, out) == W_pt.T in bf16 (MXU-native) so the
    kernel computes x @ W + b; the output weight is a (1, H_last) bf16 row.
    Biases stay f32 (the bias add / ReLU run in f32).
    """
    dims = [input_size] + list(hidden_sizes)
    weights, biases = [], []
    for din, dout in zip(dims[:-1], dims[1:]):
        key, kw, kb = jax.random.split(key, 3)
        bound = 1.0 / (din ** 0.5)
        w = jax.random.uniform(kw, (din, dout), jnp.float32, -bound, bound)
        weights.append(w.astype(jnp.bfloat16))
        biases.append(jax.random.uniform(kb, (1, dout), jnp.float32, -bound, bound))
    din = dims[-1]
    key, kw, kb = jax.random.split(key, 3)
    bound = 1.0 / (din ** 0.5)
    wo = jax.random.uniform(kw, (1, din), jnp.float32, -bound, bound).astype(jnp.bfloat16)
    bo = jax.random.uniform(kb, (1, 1), jnp.float32, -bound, bound)
    return {"weights": weights, "biases": biases, "wo": wo, "bo": bo}


def reference_forward(x, params):
    """Pure-JAX reference (f32 math, bf16-stored weights upcast)."""
    h = x.astype(jnp.float32)
    for w, b in zip(params["weights"], params["biases"]):
        h = jnp.maximum(h @ w.astype(jnp.float32) + b, 0.0)
    return h @ params["wo"].astype(jnp.float32).T + params["bo"]


if __name__ == "__main__":
    key = jax.random.PRNGKey(0)
    INPUT_SIZE = 32
    HIDDEN_SIZES = (128, 64)   # n_layers=2; sizes from the trial choices {64,128,256,512}

    key, kp = jax.random.split(key)
    params = init_params(kp, INPUT_SIZE, HIDDEN_SIZES)

    # Small batch (single tile, tb == B).
    key, kx = jax.random.split(key)
    x_small = jax.random.normal(kx, (8, INPUT_SIZE), jnp.float32)
    out_small = jax.block_until_ready(domain_discriminator_forward(x_small, params))
    ref_small = reference_forward(x_small, params)
    assert out_small.shape == (8, 1), out_small.shape
    assert jnp.allclose(out_small, ref_small, atol=5e-2, rtol=5e-2), "mismatch (small)"

    # Larger batch: multi-tile grid, ragged last block (no input padding),
    # resident single-buffered weights.
    key, kx2 = jax.random.split(key)
    x_big = jax.random.normal(kx2, (300, INPUT_SIZE), jnp.float32)
    out_big = jax.block_until_ready(
        domain_discriminator_forward(x_big, params, tile_b=128))
    ref_big = reference_forward(x_big, params)
    assert out_big.shape == (300, 1), out_big.shape
    assert jnp.allclose(out_big, ref_big, atol=5e-2, rtol=5e-2), "mismatch (big)"

    print("KERNEL_OK")
</pallas_src>

<mosaic_0001>
module attributes {stable_mosaic.version = 11 : i64} {
  func.func @kernel(%arg0: i32, %arg1: memref<8x32xbf16, #tpu.memory_space<vmem>>, %arg2: memref<32x128xbf16, #tpu.memory_space<vmem>>, %arg3: memref<1x128xf32, #tpu.memory_space<vmem>>, %arg4: memref<128x64xbf16, #tpu.memory_space<vmem>>, %arg5: memref<1x64xf32, #tpu.memory_space<vmem>>, %arg6: memref<1x64xbf16, #tpu.memory_space<vmem>>, %arg7: memref<1x1xf32, #tpu.memory_space<smem>>, %arg8: memref<1x1x8xf32, #tpu.memory_space<vmem>>) attributes {dimension_semantics = [#tpu.dimension_semantics<parallel>], iteration_bounds = array<i64: 1>, scalar_prefetch = 0 : i64, scratch_operands = 0 : i64, tpu.core_type = #tpu.core_type<tc>, window_params = [{transform_indices = @transform_0, window_bounds = array<i64: 8, 32>}, {pipeline_mode = #tpu.pipeline_mode<synchronous>, transform_indices = @transform_1, window_bounds = array<i64: 32, 128>}, {pipeline_mode = #tpu.pipeline_mode<synchronous>, transform_indices = @transform_2, window_bounds = array<i64: 1, 128>}, {pipeline_mode = #tpu.pipeline_mode<synchronous>, transform_indices = @transform_3, window_bounds = array<i64: 128, 64>}, {pipeline_mode = #tpu.pipeline_mode<synchronous>, transform_indices = @transform_4, window_bounds = array<i64: 1, 64>}, {pipeline_mode = #tpu.pipeline_mode<synchronous>, transform_indices = @transform_5, window_bounds = array<i64: 1, 64>}, {transform_indices = @transform_6, window_bounds = array<i64: 1, 1>}, {transform_indices = @transform_7, window_bounds = array<i64: 1, 1, 8>}]} {
    %c0 = arith.constant 0 : index
    %c0_0 = arith.constant 0 : index
    %0 = vector.load %arg1[%c0, %c0_0] : memref<8x32xbf16, #tpu.memory_space<vmem>>, vector<8x32xbf16>
    %c0_1 = arith.constant 0 : index
    %c0_2 = arith.constant 0 : index
    %1 = vector.load %arg2[%c0_1, %c0_2] : memref<32x128xbf16, #tpu.memory_space<vmem>>, vector<32x128xbf16>
    %c0_3 = arith.constant 0 : index
    %c0_4 = arith.constant 0 : index
    %2 = vector.load %arg3[%c0_3, %c0_4] : memref<1x128xf32, #tpu.memory_space<vmem>>, vector<1x128xf32>
    %cst = arith.constant dense<0.000000e+00> : vector<8x128xf32>
    %3 = tpu.matmul %0, %1, %cst {dimension_numbers = #tpu.dot_dimension_numbers<[1], [0], [0], [1], [0, 0, 1, 1], [], []>} : vector<8x32xbf16>, vector<32x128xbf16>, vector<8x128xf32> -> vector<8x128xf32>
    %4 = vector.broadcast %2 : vector<1x128xf32> to vector<8x128xf32>
    %5 = arith.addf %3, %4 : vector<8x128xf32>
    %cst_5 = arith.constant 0.000000e+00 : f32
    %6 = vector.broadcast %cst_5 : f32 to vector<8x128xf32>
    %7 = arith.maximumf %5, %6 : vector<8x128xf32>
    %8 = arith.truncf %7 : vector<8x128xf32> to vector<8x128xbf16>
    %c0_6 = arith.constant 0 : index
    %c0_7 = arith.constant 0 : index
    %9 = vector.load %arg4[%c0_6, %c0_7] : memref<128x64xbf16, #tpu.memory_space<vmem>>, vector<128x64xbf16>
    %c0_8 = arith.constant 0 : index
    %c0_9 = arith.constant 0 : index
    %10 = vector.load %arg5[%c0_8, %c0_9] : memref<1x64xf32, #tpu.memory_space<vmem>>, vector<1x64xf32>
    %cst_10 = arith.constant dense<0.000000e+00> : vector<8x64xf32>
    %11 = tpu.matmul %8, %9, %cst_10 {dimension_numbers = #tpu.dot_dimension_numbers<[1], [0], [0], [1], [0, 0, 1, 1], [], []>} : vector<8x128xbf16>, vector<128x64xbf16>, vector<8x64xf32> -> vector<8x64xf32>
    %12 = vector.broadcast %10 : vector<1x64xf32> to vector<8x64xf32>
    %13 = arith.addf %11, %12 : vector<8x64xf32>
    %cst_11 = arith.constant 0.000000e+00 : f32
    %14 = vector.broadcast %cst_11 : f32 to vector<8x64xf32>
    %15 = arith.maximumf %13, %14 : vector<8x64xf32>
    %16 = arith.truncf %15 : vector<8x64xf32> to vector<8x64xbf16>
    %c0_12 = arith.constant 0 : index
    %c0_13 = arith.constant 0 : index
    %17 = vector.load %arg6[%c0_12, %c0_13] : memref<1x64xbf16, #tpu.memory_space<vmem>>, vector<1x64xbf16>
    %cst_14 = arith.constant dense<0.000000e+00> : vector<1x8xf32>
    %18 = tpu.matmul %17, %16, %cst_14 {dimension_numbers = #tpu.dot_dimension_numbers<[1], [1], [0], [0], [0, 0, 1, 0], [], []>} : vector<1x64xbf16>, vector<8x64xbf16>, vector<1x8xf32> -> vector<1x8xf32>
    %c0_15 = arith.constant 0 : index
    %c0_16 = arith.constant 0 : index
    %19 = memref.load %arg7[%c0_15, %c0_16] : memref<1x1xf32, #tpu.memory_space<smem>>
    %20 = vector.broadcast %19 : f32 to vector<1x8xf32>
    %21 = arith.addf %18, %20 : vector<1x8xf32>
    %c0_17 = arith.constant 0 : index
    %c0_18 = arith.constant 0 : index
    %c0_19 = arith.constant 0 : index
    %22 = vector.load %arg8[%c0_17, %c0_18, %c0_19] : memref<1x1x8xf32, #tpu.memory_space<vmem>>, vector<1x1x8xf32>
    %23 = vector.shape_cast %22 : vector<1x1x8xf32> to vector<1x8xf32>
    %24 = vector.shape_cast %21 : vector<1x8xf32> to vector<1x1x8xf32>
    tpu.vector_store %arg8[%c0_17, %c0_18, %c0_19], %24 {strides = array<i32>} : memref<1x1x8xf32, #tpu.memory_space<vmem>>, vector<1x1x8xf32>,
    return
  }
  func.func @transform_0(%arg0: i32) -> (i32, i32) {
    %c0_i32 = arith.constant 0 : i32
    %c0_i32_0 = arith.constant 0 : i32
    return %arg0, %c0_i32 : i32, i32
  }
  func.func @transform_1(%arg0: i32) -> (i32, i32) {
    %c0_i32 = arith.constant 0 : i32
    %c0_i32_0 = arith.constant 0 : i32
    %c0_i32_1 = arith.constant 0 : i32
    return %c0_i32, %c0_i32_0 : i32, i32
  }
  func.func @transform_2(%arg0: i32) -> (i32, i32) {
    %c0_i32 = arith.constant 0 : i32
    %c0_i32_0 = arith.constant 0 : i32
    %c0_i32_1 = arith.constant 0 : i32
    return %c0_i32, %c0_i32_0 : i32, i32
  }
  func.func @transform_3(%arg0: i32) -> (i32, i32) {
    %c0_i32 = arith.constant 0 : i32
    %c0_i32_0 = arith.constant 0 : i32
    %c0_i32_1 = arith.constant 0 : i32
    return %c0_i32, %c0_i32_0 : i32, i32
  }
  func.func @transform_4(%arg0: i32) -> (i32, i32) {
    %c0_i32 = arith.constant 0 : i32
    %c0_i32_0 = arith.constant 0 : i32
    %c0_i32_1 = arith.constant 0 : i32
    return %c0_i32, %c0_i32_0 : i32, i32
  }
  func.func @transform_5(%arg0: i32) -> (i32, i32) {
    %c0_i32 = arith.constant 0 : i32
    %c0_i32_0 = arith.constant 0 : i32
    %c0_i32_1 = arith.constant 0 : i32
    return %c0_i32, %c0_i32_0 : i32, i32
  }
  func.func @transform_6(%arg0: i32) -> (i32, i32) {
    %c0_i32 = arith.constant 0 : i32
    %c0_i32_0 = arith.constant 0 : i32
    %c0_i32_1 = arith.constant 0 : i32
    return %c0_i32, %c0_i32_0 : i32, i32
  }
  func.func @transform_7(%arg0: i32) -> (i32, i32, i32) {
    %c0_i32 = arith.constant 0 : i32
    %c0_i32_0 = arith.constant 0 : i32
    %c0_i32_1 = arith.constant 0 : i32
    return %arg0, %c0_i32, %c0_i32_0 : i32, i32, i32
  }
}

</mosaic_0001>

<bundles_post_ra>
// kernel: tpu_custom_call.1
= control target key start
LH: loop header
LB: loop body
LE: loop exit
PB: predicated region body
PF: predicated region fallthrough
CT: control target
= control target key end

     0   :  { %s363_s0 = inlined_call_operand.vmem [shape: bf16[8,32], index: 0, kind: input, shape index: {}]   ;;  %s364_s1 = inlined_call_operand.vmem [shape: bf16[32,128], index: 1, kind: input, shape index: {}]   ;;  %s365_s2 = inlined_call_operand.vmem [shape: f32[1,128], index: 2, kind: input, shape index: {}]   ;;  %s366_s3 = inlined_call_operand.vmem [shape: bf16[128,64], index: 3, kind: input, shape index: {}]   ;;  %s367_s4 = inlined_call_operand.vmem [shape: f32[1,64], index: 4, kind: input, shape index: {}]   ;;  %s368_s5 = inlined_call_operand.vmem [shape: bf16[1,64], index: 5, kind: input, shape index: {}]   ;;  %s369_s6 = inlined_call_operand.<no memory space> [shape: f32[1,1], index: 6, kind: input, shape index: {}]   ;;  %s370_s7 = inlined_call_operand.hbm [shape: f32[1,1,8], index: 7, kind: output, shape index: {}]  }
   0x1   :  { %v236_v0 = vld [vmem:[%s364_s1 + $0x8] sm:$0xff]  ;;  %v244_v1 = vld [vmem:[%s366_s3 + $0x38] sm:$0xff]  ;;  %v235_v2 = vld [vmem:[%s364_s1] sm:$0xff] }
   0x2   :  { %60 = vmatpush.bf16.msra.mxu0 %v236_v0  ;;  %137 = vmatpush.bf16.msra.mxu1 %v244_v1  ;;  %v243_v3 = vld [vmem:[%s366_s3 + $0x30] sm:$0xff] }
   0x3   :  { %13 = vsyncpa [#allocation4], 0  ;;  %v29_v4 = vld [vmem:[%s363_s0] sm:$0xf]  ;;  %vm50_vm0 = vcmask 261120   ;;  %v242_v5 = vld [vmem:[%s366_s3 + $0x28] sm:$0xff]  ;;  %v154_v25 = vstv %s369_s6 }
   0x4   :  { %v241_v6 = vld [vmem:[%s366_s3 + $0x20] sm:$0xff]  ;;  %v240_v7 = vld [vmem:[%s366_s3 + $0x18] sm:$0xff]  ;;  %v239_v8 = vld [vmem:[%s366_s3 + $0x10] sm:$0xff]  ;;  %vm155_vm1 = vcmask 523264   ;;  %s274_s27 = smov [#allocation3]   ;;  %s184_s30 = sshll.u32 %s370_s7, 4  ;;  %s185_s30 = int_to_ptr.hbm [resolvable:$true] %s184_s30 }
   0x5   :  { %v238_v9 = vld [vmem:[%s366_s3 + $0x8] sm:$0xff]  ;;  %v237_v10 = vld [vmem:[%s366_s3] sm:$0xff]  ;;  %s182_s28 = sshll.u32 %s274_s27, 4  ;;  %vm175_vm2 = vcmask 57344   ;;  %s183_s28 = int_to_ptr.vmem [resolvable:$true] %s182_s28 }
   0x6   :  { %61 = vmatpush.bf16.msra.mxu0 %v235_v2  ;;  %138 = vmatpush.bf16.msra.mxu1 %v243_v3  ;;  %v246_v11 = vld [vmem:[%s365_s2] ss:$0 sm:$0xff] }
   0x7   :  { %v247_v17 = vld [vmem:[%s367_s4] ss:$0 sm:$0xff] }
   0x8   :  { %v152_v24 = vld [vmem:[%s368_s5] sm:$0x1] }
   0x9   :  { %201 = vmatmul.msk.bf16.vlgmr.msra.gmra.mxu0 %vm50_vm0, %v29_v4 }
   0xa   :  { %139 = vmatpush.bf16.msra.mxu1 %v242_v5 }
   0xe   :  { %140 = vmatpush.bf16.msra.mxu1 %v241_v6 }
  0x12   :  { %141 = vmatpush.bf16.msra.mxu1 %v240_v7 }
  0x16   :  { %142 = vmatpush.bf16.msra.mxu1 %v239_v8 }
  0x1a   :  { %143 = vmatpush.bf16.msra.mxu1 %v238_v9 }
  0x1e   :  { %144 = vmatpush.bf16.msra.mxu1 %v237_v10 }
  0x86   :  { %v63_v12 = vpop.f32.mrf.mxu0 }
  0x87   :  { %v64_v13 = vadd.f32 %v246_v11, %v63_v12 }
  0x89   :  { %v67_v14 = vmax.f32 %v64_v13, 0.0 }
  0x8b   :  { %v68_v15 = vpack.c.bf16 %v67_v14, %v67_v14 }
  0x8d   :  { %145 = vmatmul.bf16.vlgmr.msra.gmra.mxu1 %v68_v15 }
  0x8e   :  { %v65_v16 = vpop.f32.mrf.mxu0 }
 0x10a   :  { %v146_v18 = vpop.f32.mrf.mxu1 }
 0x10b   :  { %v147_v19 = vadd.f32 %v247_v17, %v146_v18 }
 0x10d   :  { %v150_v20 = vmax.f32 %v147_v19, 0.0 }
 0x10f   :  { %v151_v21 = vpack.c.bf16 %v150_v20, %v150_v20 }
 0x111   :  { %v160_v22 = vsel %vm155_vm1, %v151_v21, 0 }
 0x112   :  { %v148_v23 = vpop.f32.mrf.mxu1  ;;  %169 = vmatpush.bf16.xpose.msra.mxu2 %v160_v22 }
 0x119   :  { %234 = vmatmul.msk.bf16.vlgmr.msra.gmra.mxu2 %vm155_vm1, %v152_v24 }
 0x19c   :  { %v171_v26 = vpop.f32.mrf.mxu2 }
 0x19d   :  { %v172_v27 = vadd.f32 %v171_v26, %v154_v25 }
 0x19f   :  { %176 = vst.msk [vmem:[#allocation3] sm:$0x1] %vm175_vm2, %v172_v27 }
 0x1a0   :  { %187 = dma.vmem_to_hbm [thread:$0]  %s183_s28, 16, %s185_s30, [#allocation4]  }
 0x1a4   :  { %v173_v28 = vpop.f32.mrf.mxu2 }
 0x1a5   :  { %272 = dma.done.wait [#allocation4], 16  }
 0x1a6   :  { %273 = vsyncadd [#allocation4], 4294967280 }
 0x1a7   :  { %192 = vsyncpa [#allocation4], 1 }

</bundles_post_ra>
